<compile_context>
chip_gen: v6e
topology: v6e:2x2x1
jax: 0.10.0
libtpu: 0.0.40
codegen_flags: <defaults>
</compile_context>

<pallas_src>
import functools

import jax
import jax.numpy as jnp
from jax.experimental import pallas as pl
from jax.experimental.pallas import tpu as pltpu

K_SIZE = 3  # ECA kernel size (matches Net(..., k_size=3))


# --------------------------------------------------------------------------
# Shared in-kernel helper: k=3 channel conv (zero padding, no bias) + sigmoid
# on a (1, C) lane vector of pooled means.  Returns the gate as (1, C, 1) f32
# (channels on sublanes) so it broadcasts along lanes against the (1, C, S)
# activation slab.
# --------------------------------------------------------------------------
def _channel_gate(w_ref, pooled):
    C = pooled.shape[1]
    # PyTorch Conv1d cross-correlation with zero padding:
    #   out[c] = w[0]*y[c-1] + w[1]*y[c] + w[2]*y[c+1]
    yp = jnp.pad(pooled, ((0, 0), (1, 1)))                 # (1, C+2)
    conv = (w_ref[0] * yp[:, 0:C]
            + w_ref[1] * yp[:, 1:C + 1]
            + w_ref[2] * yp[:, 2:C + 2])                   # (1, C)
    return jax.nn.sigmoid(conv)[:, :, None]                # (1, C, 1) f32


# --------------------------------------------------------------------------
# Fused single-pass kernel: per-batch slab resident in VMEM.
# --------------------------------------------------------------------------
def _eca_fused_kernel(w_ref, x_ref, o_ref, *, inv_spatial):
    xf = x_ref[...].astype(jnp.float32)                    # (1, C, S)
    pooled = jnp.sum(xf, axis=2) * inv_spatial             # (1, C) mean
    gate = _channel_gate(w_ref, pooled)                    # (1, C, 1) f32
    o_ref[...] = (xf * gate).astype(o_ref.dtype)


# --------------------------------------------------------------------------
# Two-pass fallback, pass 1: spatial-mean reduction + conv + sigmoid -> gate.
# --------------------------------------------------------------------------
def _gate_kernel(w_ref, x_ref, g_ref, acc_ref, *,
                 inv_spatial, tile_s, total_s, needs_mask):
    s_idx = pl.program_id(1)
    last = pl.num_programs(1) - 1

    @pl.when(s_idx == 0)
    def _init():
        acc_ref[...] = jnp.zeros_like(acc_ref)

    x = x_ref[...].astype(jnp.float32)                     # (1, C, Ts)

    if needs_mask:
        # Mask only on the last (partial) spatial tile; full tiles accumulate
        # without the iota/compare/select VALU work.
        @pl.when(s_idx != last)
        def _full():
            acc_ref[...] += jnp.sum(x, axis=2)

        @pl.when(s_idx == last)
        def _partial():
            lane = jax.lax.broadcasted_iota(jnp.int32, x.shape, 2)
            xm = jnp.where(s_idx * tile_s + lane < total_s, x, 0.0)
            acc_ref[...] += jnp.sum(xm, axis=2)
    else:
        acc_ref[...] += jnp.sum(x, axis=2)

    @pl.when(s_idx == last)
    def _finish():
        # Gate is emitted directly in (1, C, 1) layout (channels on sublanes)
        # so pass 2 can broadcast it along lanes with no wrapper reshape.
        g_ref[...] = _channel_gate(w_ref, acc_ref[...] * inv_spatial)


# --------------------------------------------------------------------------
# Two-pass fallback, pass 2 (hot path): o = x * gate, lane-dense blocks.
# --------------------------------------------------------------------------
def _scale_kernel(g_ref, x_ref, o_ref):
    g = g_ref[...]                                         # (1, C, 1) f32
    xf = x_ref[...].astype(jnp.float32)                    # (1, C, Ts)
    o_ref[...] = (xf * g).astype(o_ref.dtype)              # multiply in f32


# --------------------------------------------------------------------------
# Wrapper-level tiling / budgeting helpers.
# --------------------------------------------------------------------------
def _tpu_vmem_capacity():
    try:
        info = pltpu.get_tpu_info()
        cap = getattr(info, "vmem_capacity_bytes", None)
        if cap:
            return int(cap)
    except Exception:
        pass
    return 64 * 1024 * 1024  # conservative: v7x per-TensorCore VMEM


def _pick_spatial_tile(C, S, itemsize, target_bytes):
    """Lane-aligned spatial tile; prefer an exact divisor of S (unmasked vst)."""
    if S <= 128 or C * S * itemsize <= target_bytes:
        return int(S)                                      # full, lane-dense
    max_s = min(S, max(128, target_bytes // (C * itemsize)))
    ts = (max_s // 128) * 128
    t = ts
    while t >= 128:                 # largest multiple of 128 dividing S
        if S % t == 0:
            return int(t)
        t -= 128
    return int(ts)                  # no divisor: last tile handled via mask


# --------------------------------------------------------------------------
# Public forward.
# --------------------------------------------------------------------------
def eca_forward(x, conv_weight, *, force_two_pass=False, target_block_bytes=None):
    """x: (B, C, H, W). conv_weight: (1, 1, K_SIZE) Conv1d weight (no bias)."""
    B, C, H, W = x.shape
    S = H * W
    x_flat = x.reshape(B, C, S)                            # lane-dense last dim
    w = conv_weight.reshape(K_SIZE).astype(jnp.float32)
    inv_spatial = 1.0 / S

    vmem_cap = _tpu_vmem_capacity()
    is_small_vmem = vmem_cap <= (64 << 20)                 # v7x-class

    # ---- Fused single-pass path: 2N HBM bytes instead of 3N --------------
    fused_limit = min((3 * vmem_cap) // 4, 96 << 20)       # 48 MiB v7x / 96 MiB v5e,v6e
    slab_f32 = C * S * 4                                   # f32 working set (covers bf16 upcast)
    fuse_ok = (not force_two_pass) and (4 * slab_f32 + (4 << 20) <= fused_limit)

    if fuse_ok:
        out_flat = pl.pallas_call(
            functools.partial(_eca_fused_kernel, inv_spatial=inv_spatial),
            out_shape=jax.ShapeDtypeStruct((B, C, S), x.dtype),
            grid_spec=pltpu.PrefetchScalarGridSpec(
                num_scalar_prefetch=0,
                grid=(B,),
                in_specs=[
                    pl.BlockSpec(memory_space=pltpu.SMEM),            # conv w
                    pl.BlockSpec((1, C, S), lambda b: (b, 0, 0)),     # x slab
                ],
                out_specs=pl.BlockSpec((1, C, S), lambda b: (b, 0, 0)),
            ),
            compiler_params=pltpu.CompilerParams(
                dimension_semantics=("parallel",),
                vmem_limit_bytes=fused_limit,
            ),
        )(w, x_flat)
        return out_flat.reshape(B, C, H, W)

    # ---- Two-pass fallback (slab too large for resident-VMEM fusion) -----
    if target_block_bytes is None:
        # v7x: bigger tiles (8 MiB) amortize per-step overhead at 3.2 TB/s;
        # v5e/v6e are already near roofline at 4 MiB.
        target_block_bytes = (8 << 20) if is_small_vmem else (4 << 20)
    two_pass_limit = (48 << 20) if is_small_vmem else (32 << 20)

    ts = _pick_spatial_tile(C, S, x.dtype.itemsize, target_block_bytes)
    n_s = pl.cdiv(S, ts)
    needs_mask = (S % ts) != 0

    # Pass 1: gate = sigmoid(conv1d(mean_spatial(x))) -> (B, C, 1) f32
    gate = pl.pallas_call(
        functools.partial(_gate_kernel, inv_spatial=inv_spatial, tile_s=ts,
                          total_s=S, needs_mask=needs_mask),
        out_shape=jax.ShapeDtypeStruct((B, C, 1), jnp.float32),
        grid_spec=pltpu.PrefetchScalarGridSpec(
            num_scalar_prefetch=0,
            grid=(B, n_s),
            in_specs=[
                pl.BlockSpec(memory_space=pltpu.SMEM),                # conv w
                pl.BlockSpec((1, C, ts), lambda b, s: (b, 0, s)),     # x tile
            ],
            out_specs=pl.BlockSpec((1, C, 1), lambda b, s: (b, 0, 0)),
            scratch_shapes=[pltpu.VMEM((1, C), jnp.float32)],
        ),
        compiler_params=pltpu.CompilerParams(
            dimension_semantics=("parallel", "arbitrary"),
            vmem_limit_bytes=two_pass_limit,
        ),
    )(w, x_flat)

    # Pass 2: o = x * gate (pure elementwise, lane-dense tiles)
    out_flat = pl.pallas_call(
        _scale_kernel,
        out_shape=jax.ShapeDtypeStruct((B, C, S), x.dtype),
        grid_spec=pltpu.PrefetchScalarGridSpec(
            num_scalar_prefetch=0,
            grid=(B, n_s),
            in_specs=[
                pl.BlockSpec((1, C, 1), lambda b, s: (b, 0, 0)),      # gate
                pl.BlockSpec((1, C, ts), lambda b, s: (b, 0, s)),     # x tile
            ],
            out_specs=pl.BlockSpec((1, C, ts), lambda b, s: (b, 0, s)),
        ),
        compiler_params=pltpu.CompilerParams(
            dimension_semantics=("parallel", "parallel"),
            vmem_limit_bytes=two_pass_limit,
        ),
    )(gate, x_flat)

    return out_flat.reshape(B, C, H, W)


# --------------------------------------------------------------------------
# Pure-JAX reference mirroring the PyTorch forward.
# --------------------------------------------------------------------------
def eca_reference(x, conv_weight):
    xf = x.astype(jnp.float32)
    y = jnp.mean(xf, axis=(2, 3))                          # (B, C)
    w = conv_weight.reshape(K_SIZE).astype(jnp.float32)
    yp = jnp.pad(y, ((0, 0), (1, 1)))
    C = x.shape[1]
    conv = (w[0] * yp[:, 0:C] + w[1] * yp[:, 1:C + 1] + w[2] * yp[:, 2:C + 2])
    gate = jax.nn.sigmoid(conv)
    return (xf * gate[:, :, None, None]).astype(x.dtype)


if __name__ == "__main__":
    key = jax.random.PRNGKey(0)
    kx, kw, kx2 = jax.random.split(key, 3)

    # Small shapes consistent with the module: batch=2, channels=4, spatial=16.
    B, C, H, W = 2, 4, 16, 16
    x = jax.random.normal(kx, (B, C, H, W), dtype=jnp.float32)

    # Conv1d(1, 1, kernel_size=3, bias=False) weight (PyTorch-like uniform init).
    bound = 1.0 / (K_SIZE ** 0.5)
    conv_weight = jax.random.uniform(
        kw, (1, 1, K_SIZE), minval=-bound, maxval=bound, dtype=jnp.float32)

    ref = eca_reference(x, conv_weight)

    # 1) Fused resident-slab path (default for shapes that fit VMEM budget).
    out_fused = jax.block_until_ready(eca_forward(x, conv_weight))
    assert out_fused.shape == (B, C, H, W)
    assert jnp.allclose(out_fused, ref, atol=1e-5, rtol=1e-5)

    # 2) Two-pass fallback path (forced), exercising the tiled spatial reduction.
    out_two = jax.block_until_ready(
        eca_forward(x, conv_weight, force_two_pass=True, target_block_bytes=2048))
    assert jnp.allclose(out_two, ref, atol=1e-5, rtol=1e-5)

    # 3) Two-pass fallback with a ragged spatial extent (masked last tile).
    x2 = jax.random.normal(kx2, (B, C, 12, 12), dtype=jnp.float32)
    ref2 = eca_reference(x2, conv_weight)
    out2 = jax.block_until_ready(
        eca_forward(x2, conv_weight, force_two_pass=True, target_block_bytes=2048))
    assert jnp.allclose(out2, ref2, atol=1e-5, rtol=1e-5)

    print("KERNEL_OK")
</pallas_src>

<mosaic_0001>
module attributes {stable_mosaic.version = 11 : i64} {
  func.func @_eca_fused_kernel(%arg0: i32, %arg1: memref<3xf32, #tpu.memory_space<smem>>, %arg2: memref<1x4x256xf32, #tpu.memory_space<vmem>>, %arg3: memref<1x4x256xf32, #tpu.memory_space<vmem>>) attributes {dimension_semantics = [#tpu.dimension_semantics<parallel>], iteration_bounds = array<i64: 2>, scalar_prefetch = 0 : i64, scratch_operands = 0 : i64, tpu.core_type = #tpu.core_type<tc>, window_params = [{transform_indices = @transform_0, window_bounds = array<i64: 3>}, {transform_indices = @transform_1, window_bounds = array<i64: 1, 4, 256>}, {transform_indices = @transform_2, window_bounds = array<i64: 1, 4, 256>}]} {
    %c0 = arith.constant 0 : index
    %c0_0 = arith.constant 0 : index
    %c0_1 = arith.constant 0 : index
    %0 = vector.load %arg2[%c0, %c0_0, %c0_1] : memref<1x4x256xf32, #tpu.memory_space<vmem>>, vector<1x4x256xf32>
    %cst = arith.constant dense<0.000000e+00> : vector<1x4xf32>
    %1 = vector.multi_reduction <add>, %0, %cst [2] : vector<1x4x256xf32> to vector<1x4xf32>
    %cst_2 = arith.constant 3.906250e-03 : f32
    %2 = vector.broadcast %cst_2 : f32 to vector<1x4xf32>
    %3 = arith.mulf %1, %2 : vector<1x4xf32>
    %c0_i32 = arith.constant 0 : i32
    %4 = arith.sitofp %c0_i32 : i32 to f32
    %5 = vector.broadcast %4 : f32 to vector<1x1xf32>
    %6 = tpu.concatenate %5, %3 in 1 : vector<1x1xf32>, vector<1x4xf32> -> vector<1x5xf32>
    %7 = vector.broadcast %4 : f32 to vector<1x1xf32>
    %8 = tpu.concatenate %6, %7 in 1 : vector<1x5xf32>, vector<1x1xf32> -> vector<1x6xf32>
    %c0_3 = arith.constant 0 : index
    %9 = memref.load %arg1[%c0_3] : memref<3xf32, #tpu.memory_space<smem>>
    %10 = vector.extract_strided_slice %8 {offsets = [0, 0], sizes = [1, 4], strides = [1, 1]} : vector<1x6xf32> to vector<1x4xf32>
    %11 = vector.broadcast %9 : f32 to vector<1x4xf32>
    %12 = arith.mulf %11, %10 : vector<1x4xf32>
    %c1 = arith.constant 1 : index
    %13 = memref.load %arg1[%c1] : memref<3xf32, #tpu.memory_space<smem>>
    %14 = vector.extract_strided_slice %8 {offsets = [0, 1], sizes = [1, 4], strides = [1, 1]} : vector<1x6xf32> to vector<1x4xf32>
    %15 = vector.broadcast %13 : f32 to vector<1x4xf32>
    %16 = arith.mulf %15, %14 : vector<1x4xf32>
    %17 = arith.addf %12, %16 : vector<1x4xf32>
    %c2 = arith.constant 2 : index
    %18 = memref.load %arg1[%c2] : memref<3xf32, #tpu.memory_space<smem>>
    %19 = vector.extract_strided_slice %8 {offsets = [0, 2], sizes = [1, 4], strides = [1, 1]} : vector<1x6xf32> to vector<1x4xf32>
    %20 = vector.broadcast %18 : f32 to vector<1x4xf32>
    %21 = arith.mulf %20, %19 : vector<1x4xf32>
    %22 = arith.addf %17, %21 : vector<1x4xf32>
    %23 = arith.negf %22 : vector<1x4xf32>
    %24 = math.exp %23 : vector<1x4xf32>
    %cst_4 = arith.constant 1.000000e+00 : f32
    %25 = vector.broadcast %cst_4 : f32 to vector<1x4xf32>
    %26 = arith.addf %25, %24 : vector<1x4xf32>
    %27 = arith.divf %25, %26 : vector<1x4xf32>
    %28 = vector.shape_cast %27 : vector<1x4xf32> to vector<1x4x1xf32>
    %29 = vector.broadcast %28 : vector<1x4x1xf32> to vector<1x4x256xf32>
    %30 = arith.mulf %0, %29 : vector<1x4x256xf32>
    %c0_5 = arith.constant 0 : index
    %c0_6 = arith.constant 0 : index
    %c0_7 = arith.constant 0 : index
    %31 = vector.load %arg3[%c0_5, %c0_6, %c0_7] : memref<1x4x256xf32, #tpu.memory_space<vmem>>, vector<1x4x256xf32>
    tpu.vector_store %arg3[%c0_5, %c0_6, %c0_7], %30 {strides = array<i32>} : memref<1x4x256xf32, #tpu.memory_space<vmem>>, vector<1x4x256xf32>,
    return
  }
  func.func @transform_0(%arg0: i32) -> i32 {
    %c0_i32 = arith.constant 0 : i32
    %c0_i32_0 = arith.constant 0 : i32
    return %c0_i32 : i32
  }
  func.func @transform_1(%arg0: i32) -> (i32, i32, i32) {
    %c0_i32 = arith.constant 0 : i32
    %c0_i32_0 = arith.constant 0 : i32
    %c0_i32_1 = arith.constant 0 : i32
    return %arg0, %c0_i32, %c0_i32_0 : i32, i32, i32
  }
  func.func @transform_2(%arg0: i32) -> (i32, i32, i32) {
    %c0_i32 = arith.constant 0 : i32
    %c0_i32_0 = arith.constant 0 : i32
    %c0_i32_1 = arith.constant 0 : i32
    return %arg0, %c0_i32, %c0_i32_0 : i32, i32, i32
  }
}

</mosaic_0001>

<bundles_post_ra>
// kernel: tpu_custom_call.1
= control target key start
LH: loop header
LB: loop body
LE: loop exit
PB: predicated region body
PF: predicated region fallthrough
CT: control target
= control target key end

     0   :  { %7 = vsyncpa [#allocation5], 0  ;;  %s702_s0 = inlined_call_operand.hbm [shape: f32[3], index: 0, kind: input, shape index: {}]   ;;  %s703_s1 = inlined_call_operand.hbm [shape: f32[2,4,256], index: 1, kind: input, shape index: {}]   ;;  %s704_s2 = inlined_call_operand.hbm [shape: f32[2,4,256], index: 2, kind: output, shape index: {}]  }
   0x1   :  { %8 = vsyncpa [#allocation3], 0 }
   0x2   :  { %10 = vsyncpa [#allocation3 + $0x1], 0 }
   0x3   :  { %11 = vsyncpa [#allocation4], 0 }
   0x4   :  { %13 = vsyncpa [#allocation4 + $0x1], 0  ;;  %s552_s9 = smov 0   ;;  %s554_s10 = smov 0  }
   0x5   :  { %s556_s11 = smov 0   ;;  %s558_s12 = smov 0  }
   0x6 LB: > { %s573_s13 = sadd.s32 4294967295, %s529_s12   ;;  %s336_s14 = sadd.s32 4294967294, %s529_s12   ;;  %s529_s12 = sphi %s558_s12, %s724_s12   ;;  %s525_s11 = sphi %s556_s11, %s723_s11   ;;  %s521_s10 = sphi %s554_s10, %s722_s10   ;;  %s517_s9 = sphi %s552_s9, %s721_s9  }
   0x7   : > { %p60_p0 = scmp.ne.s32.totalorder %s521_s10, %s517_s9  ;;  %p705_p1 = scmp.eq.s32.totalorder %s573_s13, 0 }
   0x8   : > { %p84_p2 = scmp.eq.s32.totalorder %s573_s13, 1  ;;  %p90_p3 = scmp.eq.s32.totalorder %s336_s14, 1 }
   0x9   : > { %p582_p4 = por %p705_p1, %p60_p0  ;;  %p337_p5 = scmp.ge.s32.totalorder %s529_s12, 1 }
   0xa   : > { %p587_p6 = por %p90_p3, %p60_p0  ;;  %p97_p7 = scmp.lt.s32.totalorder %s529_s12, 3 }
   0xb   : > { %s709_s15 = scalar_select %p582_p4, 1, 0 }
   0xc   : > { %s710_s16 = scalar_select %p587_p6, 1, 0 }
   0xd   : > { %p592_p8 = pnand %p337_p5, %p97_p7  ;;  %s598_s18 = sadd.s32 1, %s529_s12  }
   0xe   : > { %s44_s19 = ssub.s32 %s529_s12, %s598_s18  ;;  %s47_s20 = sadd.s32 1, %s525_s11 }
   0xf   : > { %s711_s17 = scalar_select %p592_p8, 1, 0 }
  0x10   : > { %p365_p10 = pneg %p592_p8  ;;  %p45_p12 = scmp.eq.s32.totalorder %s44_s19, 0 }
  0x11   : > { %p54_p13 = scmp.ne.s32.totalorder %s525_s11, %s521_s10  ;;  %p55_p0 = scmp.eq.s32.totalorder %s529_s12, 0 }
  0x12   : > { %p366_p11 = pnand %p365_p10, %p705_p1  ;;  %p378_p3 = scmp.lt.s32.totalorder %s529_s12, 2 }
  0x13   : > { %s531_s21 = smov [#allocation2]   ;;  %p56_p5 = por %p55_p0, %p54_p13 }
  0x14   : > { %368 = dma.hbm_to_smem (!%p366_p11), %s702_s0, 16, %s531_s21, [#allocation5]  }
  0x15   : > { %s615_s24 = scalar_select %p45_p12, %s525_s11, %s47_s20  }
  0x16   : > { %p619_p7 = por %p84_p2, %p54_p13  ;;  %s119_s26 = sand.u32 1, %s525_s11  }
  0x17   : > { %s355_s27 = sshll.u32 %s529_s12, 7  ;;  %s340_s28 = sshll.u32 %s119_s26, 3 }
  0x18   : > { %s712_s25 = scalar_select %p619_p7, 1, 0 }
  0x19   : > { %s628_s3 = scalar_lea.hbm %s703_s1, %s355_s27  ;;  %s123_s4 = scalar_lea.vmem [#allocation6], %s340_s28 }
  0x1a   : > { %s131_s5 = sshll.u32 %s123_s4, 4  ;;  %p630_p10 = pnand %p378_p3, %p56_p5  ;;  %s132_s5 = int_to_ptr.vmem [resolvable:$true] %s131_s5 }
  0x1b   : > { %s120_s7 = scalar_lea.sflag [#allocation3], %s119_s26  ;;  %s433_s8 = scalar_lea.hbm %s628_s3, 128 }
  0x1c   : > { %p434_p2 = scmp.ne.s32.totalorder %s628_s3, %s433_s8  ;;  %p435_p11 = pneg %p630_p10 }
  0x1d   : > { %s438_s20 = scalar_lea.hbm %s703_s1, 256  ;;  %p439_p0 = scmp.lt.s32.totalorder %s628_s3, %s703_s1 }
  0x1e   : > { %p436_p12 = pnand %p435_p11, %p434_p2  ;;  %p440_p3 = scmp.lt.s32.totalorder %s438_s20, %s433_s8 }
  0x20   : > { %p437_p13 = pneg %p436_p12  ;;  %p441_p5 = por %p440_p3, %p439_p0 }
  0x22   : > { %p442_p9 = pnand %p441_p5, %p437_p13 }
  0x24   : > { %445 = shalt.err (!%p442_p9)
}
  0x25   : > { %s446_s23 = scalar_lea.vmem %s132_s5, 128  ;;  %s532_s26 = smov [#allocation6]  }
  0x26   : > { %p447_p1 = scmp.ne.s32.totalorder %s132_s5, %s446_s23  ;;  %s451_s27 = sshll.u32 %s532_s26, 4  ;;  %s452_s27 = int_to_ptr.vmem [resolvable:$false] %s451_s27 }
  0x27   : > { %s453_s28 = scalar_lea.vmem %s452_s27, 256  ;;  %p454_p2 = scmp.lt.s32.totalorder %s132_s5, %s452_s27 }
  0x28   : > { %p449_p6 = pnand %p447_p1, %p435_p11  ;;  %p455_p12 = scmp.lt.s32.totalorder %s453_s28, %s446_s23 }
  0x2a   : > { %p450_p7 = pneg %p449_p6  ;;  %p456_p4 = por %p455_p12, %p454_p2 }
  0x2c   : > { %p457_p8 = pnand %p456_p4, %p450_p7 }
  0x2e   : > { %460 = shalt.err (!%p457_p8)
}
  0x2f   : > { %372 = dma.hbm_to_vmem [thread:$0]  (!%p630_p10), %s628_s3, 128, %s132_s5, %s120_s7  }
  0x30   : > { %p714_p13 = scmp.ne.s32.totalorder %s711_s17, 0 }
  0x31   : > { %p715_p9 = scmp.eq.s32.totalorder (!%p714_p13), %s573_s13, 0 }
  0x32   : > { %140 = sbr.rel (%p714_p13) target bundleno = 499 (0x1f3), region = 28 }
  0x37   : > { %504 = dma.done.wait (%p715_p9), [#allocation5], 16   ;;  %p716_p1 = pmov %p715_p9 }
  0x38   : > { %s655_s29 = sand.u32 1, %s521_s10   ;;  %p717_p4 = scmp.ne.s32.totalorder %s709_s15, 0 }
  0x39   : > { %506 = vsyncadd (%p716_p1), [#allocation5], 4294967280  ;;  %s345_s30 = sshll.u32 %s655_s29, 3  ;;  %s147_s4 = scalar_lea.sflag [#allocation3], %s655_s29 }
  0x3a   : > { %s150_s3 = scalar_lea.vmem [#allocation6], %s345_s30 }
  0x3b   : > { %508 = dma.done.wait (%p717_p4), %s147_s4, 128  }
  0x3c   : > { %510 = vsyncadd (%p717_p4), %s147_s4, 4294967168 }
  0x3d   : > { %155 = sfence }
  0x3e   : > { %v172_v0 = vld [vmem:[%s150_s3] sm:$0xff]  ;;  %vm176_vm0 = vcmask 1043456   ;;  %v184_v5 = vlaneseq  ;;  %s348_s17 = sld [smem:[#allocation2 + $0x2]]  ;;  %vm192_vm1 = vcmask 7168   ;;  %vm194_vm2 = vcmask 39936   ;;  %s533_s15 = smov 126  }
  0x3f   : > { %v174_v1 = vcombine.high %v172_v0, %v172_v0  ;;  %v177_v2 = vsel %vm176_vm0, %v172_v0, 0.0  ;;  %s347_s5 = sld [smem:[#allocation2 + $0x1]]  ;;  %s534_s6 = smov 127   ;;  %v535_v31 = vmov 839922192  }
  0x40   : > { %v185_v6 = vand.u32 127, %v184_v5  ;;  %v188_v8 = vshrl.u32 %v184_v5, 7  ;;  %s196_s7 = sld [smem:[#allocation2]]  ;;  %v230_v32 = vunpack.c.l.s4 %v535_v31  ;;  %s356_s8 = sshll.u32 %s573_s13, 7 }
  0x41   : > { %v178_v3 = vsel %vm176_vm0, %v174_v1, 0.0  ;;  %s171_s14 = scalar_lea.vmem [#allocation7], %s345_s30  ;;  %s252_s22 = scalar_lea.hbm %s704_s2, %s356_s8 }
  0x42   : > { %v179_v4 = vadd.f32 %v178_v3, %v177_v2  ;;  %v186_v7 = vadd.s32 4294967295, %v185_v6  ;;  %v223_v28 = vsub.s32 0, %v188_v8  ;;  %v231_v33 = vunpack.c.0.s8 %v230_v32  ;;  %s254_s19 = sshll.u32 %s171_s14, 4  ;;  %s240_s23 = scalar_lea.sflag [#allocation4], %s655_s29  ;;  %s255_s19 = int_to_ptr.vmem [resolvable:$true] %s254_s19 }
  0x43   : > { %s461_s26 = scalar_lea.vmem %s255_s19, 128  ;;  %p718_p8 = scmp.ne.s32.totalorder %s712_s25, 0 }
  0x44   : > { %180 = vadd.xlane.f32.xlu0 %v179_v4  ;;  %v189_v9 = vsub.s32 %v186_v7, %v188_v8  ;;  %v208_v13 = vstv %s348_s17  ;;  %v234_v34 = vsub.s32 %v231_v33, %v188_v8  ;;  %p462_p6 = scmp.ne.s32.totalorder %s255_s19, %s461_s26  ;;  %s536_s27 = smov [#allocation7]  }
  0x45   : > { %v200_v14 = vstv %s347_s5  ;;  %s465_s28 = sshll.u32 %s536_s27, 4  ;;  %s466_s28 = int_to_ptr.vmem [resolvable:$false] %s465_s28 }
  0x46   : > { %v197_v19 = vstv %s196_s7  ;;  %p463_p7 = pnand %p462_p6, %p718_p8  ;;  %s467_s13 = scalar_lea.vmem %s466_s28, 256 }
  0x47   : > { %p468_p11 = scmp.lt.s32.totalorder %s255_s19, %s466_s28  ;;  %p469_p0 = scmp.lt.s32.totalorder %s467_s13, %s461_s26 }
  0x48   : > { %p464_p10 = pneg %p463_p7 }
  0x49   : > { %p470_p3 = por %p469_p0, %p468_p11 }
  0x4b   : > { %p471_p5 = pnand %p470_p3, %p464_p10 }
  0xcd   : > { %v181_v10 = vpop.xlane.xlu0 %180 }
  0xce   : > { %v182_v11 = vmul.f32 0.00390625, %v181_v10 }
  0xd0   : > { %v190_v12 = vrot.slane %v182_v11, %v189_v9 }
  0xd2   : > { %v193_v15 = vsel %vm192_vm1, 0.0, %v190_v12 }
  0xd3   : > { %v195_v16 = vsel %vm194_vm2, %v193_v15, 0.0 }
  0xd4   : > { %v209_v17 = vmul.f32 %v208_v13, %v195_v16  ;;  %v201_v18 = vmul.f32 %v200_v14, %v195_v16  ;;  %v198_v20 = vmul.f32 %v197_v19, %v195_v16 }
  0xd6   : > { %211 = vrot.lane.b32.xlu1 %v209_v17, %s533_s15  ;;  %203 = vrot.lane.b32.xlu0 %v201_v18, %s534_s6 }
 0x148   : > { %v204_v21 = vpop.permute.xlu0 %203  ;;  %v212_v23 = vpop.permute.xlu1 %211 }
 0x149   : > { %v206_v22 = vadd.f32 %v204_v21, %v198_v20 }
 0x14b   : > { %v214_v24 = vadd.f32 %v212_v23, %v206_v22 }
 0x14d   : > { %v349_v25 = vmul.f32 -1.442695, %v214_v24 }
 0x14f   : > { %418 = vpow2.f32 %v349_v25 }
 0x15c   : > { %v419_v26 = vpop.eup %418 }
 0x15d   : > { %v218_v27 = vadd.f32 1.0, %v419_v26 }
 0x15f   : > { %420 = vrcp.f32 %v218_v27 }
 0x16c   : > { %v421_v29 = vpop.eup %420 }
 0x16d   : > { %v224_v30 = vrot.slane %v421_v29, %v223_v28 }
 0x16f   : > { %226 = vbcast.lane.b32.xlu1 %v224_v30, 256 }
 0x1e1   : > { %v227_v35 = vpop.permute.xlu1 %226 }
 0x1e2   : > { %v235_v36 = vrot.slane %v227_v35, %v234_v34 }
 0x1e4   : > { %v237_v37 = vmul.f32 %v235_v36, %v172_v0 }
 0x1e6   : > { %238 = vst [vmem:[%s171_s14] sm:$0xff] %v237_v37 }
 0x1e7   : > { %474 = shalt.err (!%p471_p5)
}
 0x1e8   : > { %s475_s30 = scalar_lea.hbm %s252_s22, 128  ;;  %s479_s3 = scalar_lea.hbm %s704_s2, 256 }
 0x1e9   : > { %p476_p2 = scmp.ne.s32.totalorder %s252_s22, %s475_s30  ;;  %p480_p9 = scmp.lt.s32.totalorder %s252_s22, %s704_s2 }
 0x1ea   : > { %p481_p1 = scmp.lt.s32.totalorder %s479_s3, %s475_s30 }
 0x1eb   : > { %p477_p12 = pnand %p476_p2, %p718_p8 }
 0x1ec   : > { %p482_p4 = por %p481_p1, %p480_p9 }
 0x1ed   : > { %p478_p13 = pneg %p477_p12 }
 0x1ef   : > { %p483_p6 = pnand %p482_p4, %p478_p13 }
 0x1f1   : > { %486 = shalt.err (!%p483_p6)
}
 0x1f2   : > { %363 = dma.vmem_to_hbm [thread:$0]  (%p718_p8), %s255_s19, 128, %s252_s22, %s240_s23  }
 0x1f3 PF: > { %s266_s15 = sand.u32 1, %s517_s9   ;;  %p719_p7 = scmp.ne.s32.totalorder %s710_s16, 0 }
 0x1f4   : > { %p720_p10 = scmp.ge.s32.totalorder %s529_s12, 2  ;;  %s267_s6 = scalar_lea.sflag [#allocation4], %s266_s15 }
 0x1f6   : > { %p374_p11 = pnand %p720_p10, %p719_p7 }
 0x1f8   : > { %p375_p0 = pneg %p374_p11 }
 0x1fa   : > { %512 = dma.done.wait (%p375_p0), %s267_s6, 128  }
 0x1fb   : > { %514 = vsyncadd (%p375_p0), %s267_s6, 4294967168  ;;  %p16_p3 = scmp.ge.s32.totalorder %s598_s18, 4   ;;  %s721_s9 = smov %s521_s10 }
 0x1fc   : > { %s722_s10 = smov %s525_s11  ;;  %s723_s11 = smov %s615_s24 }
 0x1fd   : > { %s724_s12 = smov %s598_s18  ;;  %18 = sbr.rel (!%p16_p3) target bundleno = 6 (0x6), region = 78 }
 0x202   :  { %272 = vsyncpa [#allocation3], 1 }
 0x203   :  { %274 = vsyncpa [#allocation3 + $0x1], 1 }
 0x204   :  { %275 = vsyncpa [#allocation4], 1 }
 0x205   :  { %277 = vsyncpa [#allocation4 + $0x1], 1 }
 0x206   :  { %278 = vsyncpa [#allocation5], 1 }
 0x207   :  { %280 = vsyncpa [#allocation5 + $0x1], 1 }

</bundles_post_ra>
